<compile_context>
chip_gen: v7x
topology: tpu7x:2x2x1
jax: 0.10.0
libtpu: 0.0.40
codegen_flags: <defaults>
</compile_context>

<pallas_src>
import math

import jax
import jax.numpy as jnp
from jax import lax
from jax.experimental import pallas as pl
from jax.experimental.pallas import tpu as pltpu


# Contract dim 1 of both operands: (m, k) x (n, k) -> (m, n)  (i.e. lhs @ rhs.T)
_NT = (((1,), (1,)), ((), ()))


def swiglu_kernel(x_ref, w0_ref, w1_ref, w2_ref, o_ref, acc_ref):
    """One (row-tile, hidden-tile) grid step.

    x_ref:   (tm, D)        activations (input dtype)
    w0_ref:  (th, D)        gate weight slab   (PyTorch [H, D] layout)
    w1_ref:  (th, D)        up-proj weight slab
    w2_ref:  (D, th)        down-proj weight slab (PyTorch [D, H] layout)
    o_ref:   (tm, D)        output tile (written on the last hidden step)
    acc_ref: (tm, D) f32    accumulator, persistent across the hidden axis
    """
    h = pl.program_id(1)

    @pl.when(h == 0)
    def _init():
        acc_ref[...] = jnp.zeros_like(acc_ref)

    x = x_ref[...]
    # NT matmuls: the MXU consumes the transposed (PyTorch-layout) weight
    # operand directly; no wrapper-side transposes rewriting weights in HBM.
    h0 = lax.dot_general(x, w0_ref[...], _NT, preferred_element_type=jnp.float32)
    h1 = lax.dot_general(x, w1_ref[...], _NT, preferred_element_type=jnp.float32)
    gated = (h0 * jax.nn.sigmoid(h0)) * h1            # SiLU(h0) * h1, in f32
    acc_ref[...] += lax.dot_general(
        gated.astype(x.dtype), w2_ref[...], _NT,
        preferred_element_type=jnp.float32)

    @pl.when(h == pl.num_programs(1) - 1)
    def _finalize():
        o_ref[...] = acc_ref[...].astype(o_ref.dtype)


def _round_up(a: int, b: int) -> int:
    return (a + b - 1) // b * b


def swiglu(x, w0, w1, w2, *, tm=256, th=512, vmem_limit_bytes=48 * 1024 * 1024):
    """SwiGLU FFN.

    x:      [..., D]   (leading dims are flattened into rows)
    w0, w1: [H, D]     PyTorch nn.Linear weight layout (consumed directly)
    w2:     [D, H]
    """
    orig_shape = x.shape
    D = x.shape[-1]
    M = 1
    for s in x.shape[:-1]:
        M *= s
    H = w0.shape[0]
    assert w0.shape == (H, D) and w1.shape == (H, D) and w2.shape == (D, H)

    x2 = x.reshape(M, D)

    # Row tile: as big as requested, clamped for tiny inputs; multiple of 16
    # (bf16 sublane packing; also divisible by 8 for f32).
    tm_eff = min(tm, _round_up(M, 16))
    M_pad = _round_up(M, tm_eff)
    if M_pad != M:
        x2 = jnp.pad(x2, ((0, M_pad - M), (0, 0)))

    # Hidden tile: weights are streamed one (th, D) slab at a time.
    th_eff = min(th, H)
    assert H % th_eff == 0, "act_hidden_dim must be divisible by the hidden tile"

    grid = (M_pad // tm_eff, H // th_eff)

    itemsize = jnp.dtype(x2.dtype).itemsize
    cost = pl.CostEstimate(
        flops=6 * M * D * H,        # two (M,D)x(D,H) matmuls + one (M,H)x(H,D)
        transcendentals=M * H,      # sigmoid
        bytes_accessed=(M * D * itemsize                       # x
                        + 2 * H * D * jnp.dtype(w0.dtype).itemsize  # w0, w1
                        + D * H * jnp.dtype(w2.dtype).itemsize      # w2
                        + M * D * itemsize),                   # out
    )

    out2 = pl.pallas_call(
        swiglu_kernel,
        out_shape=jax.ShapeDtypeStruct((M_pad, D), x.dtype),
        grid_spec=pltpu.PrefetchScalarGridSpec(
            num_scalar_prefetch=0,
            grid=grid,
            in_specs=[
                pl.BlockSpec((tm_eff, D), lambda i, h: (i, 0)),   # x rows
                pl.BlockSpec((th_eff, D), lambda i, h: (h, 0)),   # w0 H-slab
                pl.BlockSpec((th_eff, D), lambda i, h: (h, 0)),   # w1 H-slab
                pl.BlockSpec((D, th_eff), lambda i, h: (0, h)),   # w2 H-slab
            ],
            out_specs=pl.BlockSpec((tm_eff, D), lambda i, h: (i, 0)),
            scratch_shapes=[pltpu.VMEM((tm_eff, D), jnp.float32)],
        ),
        compiler_params=pltpu.CompilerParams(
            dimension_semantics=("parallel", "arbitrary"),
            vmem_limit_bytes=vmem_limit_bytes,
        ),
        cost_estimate=cost,
    )(x2, w0, w1, w2)

    if M_pad != M:
        out2 = out2[:M]
    return out2.reshape(orig_shape)


def swiglu_ref(x, w0, w1, w2):
    """Pure-JAX reference matching the PyTorch forward exactly."""
    h0 = x @ w0.T
    h1 = x @ w1.T
    return (jax.nn.silu(h0) * h1) @ w2.T


if __name__ == "__main__":
    # Small, lane-friendly shapes: batch=2, seq=8, d_model=128, hidden=4*d_model.
    batch, seq, d_model, hidden = 2, 8, 128, 512

    key = jax.random.PRNGKey(0)
    kx, k0, k1, k2 = jax.random.split(key, 4)

    x = jax.random.normal(kx, (batch, seq, d_model), dtype=jnp.float32)
    lim0 = 1.0 / math.sqrt(d_model)
    lim2 = 1.0 / math.sqrt(hidden)
    w0 = jax.random.uniform(k0, (hidden, d_model), jnp.float32, -lim0, lim0)
    w1 = jax.random.uniform(k1, (hidden, d_model), jnp.float32, -lim0, lim0)
    w2 = jax.random.uniform(k2, (d_model, hidden), jnp.float32, -lim2, lim2)

    ref = swiglu_ref(x, w0, w1, w2)

    # f32 activation path.
    out = swiglu(x, w0, w1, w2)
    jax.block_until_ready(out)
    assert out.shape == (batch, seq, d_model)
    assert jnp.allclose(out, ref, atol=5e-4, rtol=5e-4), "f32 mismatch vs reference"

    # bf16 activation/weight path (recommended production dtype): MXU-native
    # inputs with f32 accumulation inside the kernel; looser tolerance.
    out_bf16 = swiglu(x.astype(jnp.bfloat16), w0.astype(jnp.bfloat16),
                      w1.astype(jnp.bfloat16), w2.astype(jnp.bfloat16))
    jax.block_until_ready(out_bf16)
    assert jnp.allclose(out_bf16.astype(jnp.float32), ref, atol=2e-2, rtol=5e-2), \
        "bf16 mismatch vs reference"

    print("KERNEL_OK")
</pallas_src>

<mosaic_0001>
module attributes {stable_mosaic.version = 11 : i64} {
  func.func @swiglu_kernel(%arg0: i32, %arg1: i32, %arg2: memref<16x128xf32, #tpu.memory_space<vmem>>, %arg3: memref<512x128xf32, #tpu.memory_space<vmem>>, %arg4: memref<512x128xf32, #tpu.memory_space<vmem>>, %arg5: memref<128x512xf32, #tpu.memory_space<vmem>>, %arg6: memref<16x128xf32, #tpu.memory_space<vmem>>, %arg7: memref<16x128xf32, #tpu.memory_space<vmem>>) attributes {dimension_semantics = [#tpu.dimension_semantics<parallel>, #tpu.dimension_semantics<arbitrary>], iteration_bounds = array<i64: 1, 1>, scalar_prefetch = 0 : i64, scratch_operands = 1 : i64, tpu.core_type = #tpu.core_type<tc>, window_params = [{transform_indices = @transform_0, window_bounds = array<i64: 16, 128>}, {transform_indices = @transform_1, window_bounds = array<i64: 512, 128>}, {transform_indices = @transform_2, window_bounds = array<i64: 512, 128>}, {transform_indices = @transform_3, window_bounds = array<i64: 128, 512>}, {transform_indices = @transform_4, window_bounds = array<i64: 16, 128>}]} {
    %c0_i32 = arith.constant 0 : i32
    %0 = arith.cmpi eq, %arg1, %c0_i32 : i32
    %1 = arith.extui %0 : i1 to i32
    %c0_i32_0 = arith.constant 0 : i32
    %2 = arith.cmpi ne, %1, %c0_i32_0 : i32
    scf.if %2 {
      %cst_17 = arith.constant 0.000000e+00 : f32
      %23 = vector.broadcast %cst_17 : f32 to vector<16x128xf32>
      %c0_18 = arith.constant 0 : index
      %c0_19 = arith.constant 0 : index
      %24 = vector.load %arg7[%c0_18, %c0_19] : memref<16x128xf32, #tpu.memory_space<vmem>>, vector<16x128xf32>
      tpu.vector_store %arg7[%c0_18, %c0_19], %23 {strides = array<i32>} : memref<16x128xf32, #tpu.memory_space<vmem>>, vector<16x128xf32>,
    } else {
    }
    %c0 = arith.constant 0 : index
    %c0_1 = arith.constant 0 : index
    %3 = vector.load %arg2[%c0, %c0_1] : memref<16x128xf32, #tpu.memory_space<vmem>>, vector<16x128xf32>
    %c0_2 = arith.constant 0 : index
    %c0_3 = arith.constant 0 : index
    %4 = vector.load %arg3[%c0_2, %c0_3] : memref<512x128xf32, #tpu.memory_space<vmem>>, vector<512x128xf32>
    %cst = arith.constant dense<0.000000e+00> : vector<16x512xf32>
    %5 = tpu.matmul %3, %4, %cst {dimension_numbers = #tpu.dot_dimension_numbers<[1], [1], [0], [0], [0, 0, 1, 0], [], []>} : vector<16x128xf32>, vector<512x128xf32>, vector<16x512xf32> -> vector<16x512xf32>
    %c0_4 = arith.constant 0 : index
    %c0_5 = arith.constant 0 : index
    %6 = vector.load %arg4[%c0_4, %c0_5] : memref<512x128xf32, #tpu.memory_space<vmem>>, vector<512x128xf32>
    %cst_6 = arith.constant dense<0.000000e+00> : vector<16x512xf32>
    %7 = tpu.matmul %3, %6, %cst_6 {dimension_numbers = #tpu.dot_dimension_numbers<[1], [1], [0], [0], [0, 0, 1, 0], [], []>} : vector<16x128xf32>, vector<512x128xf32>, vector<16x512xf32> -> vector<16x512xf32>
    %8 = arith.negf %5 : vector<16x512xf32>
    %9 = math.exp %8 : vector<16x512xf32>
    %cst_7 = arith.constant 1.000000e+00 : f32
    %10 = vector.broadcast %cst_7 : f32 to vector<16x512xf32>
    %11 = arith.addf %10, %9 : vector<16x512xf32>
    %12 = arith.divf %10, %11 : vector<16x512xf32>
    %13 = arith.mulf %5, %12 : vector<16x512xf32>
    %14 = arith.mulf %13, %7 : vector<16x512xf32>
    %c0_8 = arith.constant 0 : index
    %c0_9 = arith.constant 0 : index
    %15 = vector.load %arg7[%c0_8, %c0_9] : memref<16x128xf32, #tpu.memory_space<vmem>>, vector<16x128xf32>
    %c0_10 = arith.constant 0 : index
    %c0_11 = arith.constant 0 : index
    %16 = vector.load %arg5[%c0_10, %c0_11] : memref<128x512xf32, #tpu.memory_space<vmem>>, vector<128x512xf32>
    %cst_12 = arith.constant dense<0.000000e+00> : vector<16x128xf32>
    %17 = tpu.matmul %14, %16, %cst_12 {dimension_numbers = #tpu.dot_dimension_numbers<[1], [1], [0], [0], [0, 0, 1, 0], [], []>} : vector<16x512xf32>, vector<128x512xf32>, vector<16x128xf32> -> vector<16x128xf32>
    %18 = arith.addf %15, %17 : vector<16x128xf32>
    %c0_13 = arith.constant 0 : index
    %c0_14 = arith.constant 0 : index
    %19 = vector.load %arg7[%c0_13, %c0_14] : memref<16x128xf32, #tpu.memory_space<vmem>>, vector<16x128xf32>
    tpu.vector_store %arg7[%c0_13, %c0_14], %18 {strides = array<i32>} : memref<16x128xf32, #tpu.memory_space<vmem>>, vector<16x128xf32>,
    %c0_i32_15 = arith.constant 0 : i32
    %20 = arith.cmpi eq, %arg1, %c0_i32_15 : i32
    %21 = arith.extui %20 : i1 to i32
    %c0_i32_16 = arith.constant 0 : i32
    %22 = arith.cmpi ne, %21, %c0_i32_16 : i32
    scf.if %22 {
      %c0_17 = arith.constant 0 : index
      %c0_18 = arith.constant 0 : index
      %23 = vector.load %arg7[%c0_17, %c0_18] : memref<16x128xf32, #tpu.memory_space<vmem>>, vector<16x128xf32>
      %c0_19 = arith.constant 0 : index
      %c0_20 = arith.constant 0 : index
      %24 = vector.load %arg6[%c0_19, %c0_20] : memref<16x128xf32, #tpu.memory_space<vmem>>, vector<16x128xf32>
      tpu.vector_store %arg6[%c0_19, %c0_20], %23 {strides = array<i32>} : memref<16x128xf32, #tpu.memory_space<vmem>>, vector<16x128xf32>,
    } else {
    }
    return
  }
  func.func @transform_0(%arg0: i32, %arg1: i32) -> (i32, i32) {
    %c0_i32 = arith.constant 0 : i32
    %c0_i32_0 = arith.constant 0 : i32
    return %arg0, %c0_i32 : i32, i32
  }
  func.func @transform_1(%arg0: i32, %arg1: i32) -> (i32, i32) {
    %c0_i32 = arith.constant 0 : i32
    %c0_i32_0 = arith.constant 0 : i32
    return %arg1, %c0_i32 : i32, i32
  }
  func.func @transform_2(%arg0: i32, %arg1: i32) -> (i32, i32) {
    %c0_i32 = arith.constant 0 : i32
    %c0_i32_0 = arith.constant 0 : i32
    return %arg1, %c0_i32 : i32, i32
  }
  func.func @transform_3(%arg0: i32, %arg1: i32) -> (i32, i32) {
    %c0_i32 = arith.constant 0 : i32
    %c0_i32_0 = arith.constant 0 : i32
    return %c0_i32, %arg1 : i32, i32
  }
  func.func @transform_4(%arg0: i32, %arg1: i32) -> (i32, i32) {
    %c0_i32 = arith.constant 0 : i32
    %c0_i32_0 = arith.constant 0 : i32
    return %arg0, %c0_i32 : i32, i32
  }
}

</mosaic_0001>

<bundles_post_ra>
// kernel: tpu_custom_call.1
= control target key start
LH: loop header
LB: loop body
LE: loop exit
PB: predicated region body
PF: predicated region fallthrough
CT: control target
= control target key end

     0   :  { %9 = vsyncpa [#allocation4], 0  ;;  %s1474_s0 = inlined_call_operand.hbm [shape: f32[16,128], index: 0, kind: input, shape index: {}]   ;;  %s1475_s1 = inlined_call_operand.hbm [shape: f32[512,128], index: 1, kind: input, shape index: {}]   ;;  %s1476_s2 = inlined_call_operand.hbm [shape: f32[512,128], index: 2, kind: input, shape index: {}]   ;;  %s1477_s3 = inlined_call_operand.hbm [shape: f32[128,512], index: 3, kind: input, shape index: {}]   ;;  %s1478_s4 = inlined_call_operand.hbm [shape: f32[16,128], index: 4, kind: output, shape index: {}]  }
   0x1   :  { %10 = vsyncpa [#allocation7], 0 }
   0x2   :  { %11 = vsyncpa [#allocation10], 0 }
   0x3   :  { %12 = vsyncpa [#allocation5], 0  ;;  %s1334_s15 = smov [#allocation6]   ;;  %s1335_s17 = smov [#allocation3]  }
   0x4   :  { %s30_s16 = sshll.u32 %s1334_s15, 4  ;;  %s18_s18 = sshll.u32 %s1335_s17, 4  ;;  %s31_s16 = int_to_ptr.vmem [resolvable:$true] %s30_s16  ;;  %s1368_s18 = int_to_ptr.vmem [resolvable:$true] %s18_s18 }
   0x5   :  { %s1216_s21 = scalar_lea.hbm %s1475_s1, 8192 }
   0x6   :  { %p1217_p0 = scmp.ne.s32.totalorder %s1475_s1, %s1216_s21  ;;  %p1220_p1 = scmp.lt.u32.totalorder %s1216_s21, %s1475_s1 }
   0x8   :  { %p1222_p2 = pnand %p1220_p1, %p1217_p0 }
   0xa   :  { %1225 = shalt.err (!%p1222_p2)
}
   0xb   :  { %s1226_s26 = scalar_lea.vmem %s31_s16, 8192  ;;  %p1231_p4 = scmp.lt.s32.totalorder %s31_s16, %s31_s16 }
   0xc   :  { %p1227_p3 = scmp.ne.s32.totalorder %s31_s16, %s1226_s26  ;;  %p1232_p5 = scmp.lt.s32.totalorder %s1226_s26, %s1226_s26 }
   0xe   :  { %p1233_p6 = por %p1232_p5, %p1231_p4 }
  0x10   :  { %p1234_p7 = pnand %p1233_p6, %p1227_p3 }
  0x12   :  { %1237 = shalt.err (!%p1234_p7)
}
  0x13   :  { %s1336_s27 = smov 128   ;;  %s1337_s28 = smov 8  }
  0x14   :  { %36 = dma.hbm_to_vmem [thread:$0]  %s1475_s1, 8192, %s31_s16, [#allocation7], %s1336_s27, %s1336_s27, %s1337_s28  }
  0x15   :  { %s1238_s7 = scalar_lea.hbm %s1474_s0, 256 }
  0x16   :  { %p1239_p8 = scmp.ne.s32.totalorder %s1474_s0, %s1238_s7  ;;  %p1242_p9 = scmp.lt.u32.totalorder %s1238_s7, %s1474_s0 }
  0x18   :  { %p1244_p10 = pnand %p1242_p9, %p1239_p8 }
  0x1a   :  { %1247 = shalt.err (!%p1244_p10)
}
  0x1b   :  { %s1248_s12 = scalar_lea.vmem %s1368_s18, 256  ;;  %p1253_p12 = scmp.lt.s32.totalorder %s1368_s18, %s1368_s18 }
  0x1c   :  { %p1249_p11 = scmp.ne.s32.totalorder %s1368_s18, %s1248_s12  ;;  %p1254_p13 = scmp.lt.s32.totalorder %s1248_s12, %s1248_s12 }
  0x1e   :  { %p1255_p0 = por %p1254_p13, %p1253_p12 }
  0x20   :  { %p1256_p1 = pnand %p1255_p0, %p1249_p11 }
  0x22   :  { %1259 = shalt.err (!%p1256_p1)
}
  0x23   :  { %24 = dma.hbm_to_vmem [thread:$0]  %s1474_s0, 256, %s1368_s18, [#allocation4], %s1336_s27, %s1336_s27, %s1337_s28  }
  0x24   :  { %s1338_s14 = smov [#allocation8]   ;;  %s1339_s16 = smov [#allocation9]  }
  0x25   :  { %s42_s15 = sshll.u32 %s1338_s14, 4  ;;  %s54_s17 = sshll.u32 %s1339_s16, 4  ;;  %s43_s15 = int_to_ptr.vmem [resolvable:$true] %s42_s15  ;;  %s1405_s17 = int_to_ptr.vmem [resolvable:$true] %s54_s17 }
  0x26   :  { %s1260_s21 = scalar_lea.hbm %s1476_s2, 8192 }
  0x27   :  { %p1261_p2 = scmp.ne.s32.totalorder %s1476_s2, %s1260_s21  ;;  %p1264_p3 = scmp.lt.u32.totalorder %s1260_s21, %s1476_s2 }
  0x29   :  { %p1266_p4 = pnand %p1264_p3, %p1261_p2 }
  0x2b   :  { %1269 = shalt.err (!%p1266_p4)
}
  0x2c   :  { %s1270_s0 = scalar_lea.vmem %s43_s15, 8192  ;;  %p1275_p6 = scmp.lt.s32.totalorder %s43_s15, %s43_s15 }
  0x2d   :  { %p1271_p5 = scmp.ne.s32.totalorder %s43_s15, %s1270_s0  ;;  %p1276_p7 = scmp.lt.s32.totalorder %s1270_s0, %s1270_s0 }
  0x2f   :  { %p1277_p8 = por %p1276_p7, %p1275_p6 }
  0x31   :  { %p1278_p9 = pnand %p1277_p8, %p1271_p5 }
  0x33   :  { %1281 = shalt.err (!%p1278_p9)
}
  0x34   :  { %48 = dma.hbm_to_vmem [thread:$0]  %s1476_s2, 8192, %s43_s15, [#allocation7], %s1336_s27, %s1336_s27, %s1337_s28  }
  0x35   :  { %s1282_s5 = scalar_lea.hbm %s1477_s3, 8192 }
  0x36   :  { %p1283_p10 = scmp.ne.s32.totalorder %s1477_s3, %s1282_s5  ;;  %p1286_p11 = scmp.lt.u32.totalorder %s1282_s5, %s1477_s3 }
  0x38   :  { %p1288_p12 = pnand %p1286_p11, %p1283_p10 }
  0x3a   :  { %1291 = shalt.err (!%p1288_p12)
}
  0x3b   :  { %s1292_s10 = scalar_lea.vmem %s1405_s17, 8192  ;;  %p1297_p0 = scmp.lt.s32.totalorder %s1405_s17, %s1405_s17 }
  0x3c   :  { %p1293_p13 = scmp.ne.s32.totalorder %s1405_s17, %s1292_s10  ;;  %p1298_p1 = scmp.lt.s32.totalorder %s1292_s10, %s1292_s10 }
  0x3e   :  { %p1299_p2 = por %p1298_p1, %p1297_p0 }
  0x40   :  { %p1300_p3 = pnand %p1299_p2, %p1293_p13 }
  0x42   :  { %1303 = shalt.err (!%p1300_p3)
}
  0x43   :  { %s1340_s2 = smov 512   ;;  %s1341_s11 = smov 32  }
  0x44   :  { %60 = dma.hbm_to_vmem [thread:$0]  %s1477_s3, 8192, %s1405_s17, [#allocation10], %s1340_s2, %s1340_s2, %s1341_s11  }
  0x45   :  { %1326 = dma.done.wait [#allocation4], 256  }
  0x46   :  { %1327 = vsyncadd [#allocation4], 4294967040 }
  0x47   :  { %1328 = dma.done.wait [#allocation7], 16384  }
  0x48   :  { %1329 = vsyncadd [#allocation7], 4294950912 }
  0x49   :  { %1330 = dma.done.wait [#allocation10], 8192  }
  0x4a   :  { %1331 = vsyncadd [#allocation10], 4294959104  ;;  %v97_v0 = vld [vmem:[#allocation6 + $0x80] sm:$0xff]  ;;  %v98_v1 = vld [vmem:[#allocation6 + $0x88] sm:$0xff]  ;;  %s1342_s3 = smov [#allocation11]  }
  0x4b   :  { %v81_v2 = vld [vmem:[#allocation6] sm:$0xff]  ;;  %v979_v3 = vpack.c.bf16 %v98_v1, %v97_v0  ;;  %v82_v4 = vld [vmem:[#allocation6 + $0x8] sm:$0xff]  ;;  %v99_v5 = vld [vmem:[#allocation6 + $0x90] sm:$0xff]  ;;  %s813_s13 = sshll.u32 %s1342_s3, 4  ;;  %s814_s13 = int_to_ptr.vmem [resolvable:$true] %s813_s13 }
  0x4c   :  { %v100_v6 = vld [vmem:[#allocation6 + $0x98] sm:$0xff]  ;;  %v981_v7 = vpack.c.bf16 %v82_v4, %v81_v2  ;;  %v83_v9 = vld [vmem:[#allocation6 + $0x10] sm:$0xff]  ;;  %v101_v11 = vld [vmem:[#allocation6 + $0xa0] sm:$0xff]  ;;  %s1304_s14 = scalar_lea.vmem %s814_s13, 256  ;;  %p1309_p5 = scmp.lt.s32.totalorder %s814_s13, %s814_s13 }
  0x4d   :  { %v983_v8 = vpack.c.bf16 %v100_v6, %v99_v5  ;;  %980 = vmatprep.subr.bf16.mxu1 %v979_v3  ;;  %v84_v10 = vld [vmem:[#allocation6 + $0x18] sm:$0xff]  ;;  %v315_v12 = vld [vmem:[#allocation8 + $0x80] sm:$0xff]  ;;  %v316_v13 = vld [vmem:[#allocation8 + $0x88] sm:$0xff]  ;;  %p1305_p4 = scmp.ne.s32.totalorder %s814_s13, %s1304_s14  ;;  %p1310_p6 = scmp.lt.s32.totalorder %s1304_s14, %s1304_s14 }
  0x4e   :  { %982 = vmatpush3.bf16.xpose.msra.mxu1 %v981_v7  ;;  %v102_v14 = vld [vmem:[#allocation6 + $0xa8] sm:$0xff]  ;;  %v1043_v15 = vpack.c.bf16 %v316_v13, %v315_v12  ;;  %v299_v16 = vld [vmem:[#allocation8] sm:$0xff]  ;;  %v985_v19 = vpack.c.bf16 %v84_v10, %v83_v9  ;;  %v317_v20 = vld [vmem:[#allocation8 + $0x90] sm:$0xff] }
  0x4f   :  { %984 = vmatprep.subr.bf16.mxu1 %v983_v8  ;;  %v300_v17 = vld [vmem:[#allocation8 + $0x8] sm:$0xff]  ;;  %v318_v21 = vld [vmem:[#allocation8 + $0x98] sm:$0xff]  ;;  %v987_v22 = vpack.c.bf16 %v102_v14, %v101_v11  ;;  %v301_v24 = vld [vmem:[#allocation8 + $0x10] sm:$0xff]  ;;  %p1311_p7 = por %p1310_p6, %p1309_p5 }
  0x50   :  { %v1045_v18 = vpack.c.bf16 %v300_v17, %v299_v16  ;;  %1044 = vmatprep.subr.bf16.mxu0 %v1043_v15  ;;  %v1047_v23 = vpack.c.bf16 %v318_v21, %v317_v20  ;;  %v302_v25 = vld [vmem:[#allocation8 + $0x18] sm:$0xff]  ;;  %v319_v26 = vld [vmem:[#allocation8 + $0xa0] sm:$0xff]  ;;  %v320_v27 = vld [vmem:[#allocation8 + $0xa8] sm:$0xff] }
  0x51   :  { %v85_v28 = vld [vmem:[#allocation6 + $0x20] sm:$0xff]  ;;  %v86_v29 = vld [vmem:[#allocation6 + $0x28] sm:$0xff]  ;;  %v1049_v30 = vpack.c.bf16 %v302_v25, %v301_v24  ;;  %v103_v31 = vld [vmem:[#allocation6 + $0xb0] sm:$0xff]  ;;  %v1051_v33 = vpack.c.bf16 %v320_v27, %v319_v26  ;;  %p1312_p8 = pnand %p1311_p7, %p1305_p4 }
  0x52   :  { %1046 = vmatpush3.bf16.xpose.msra.mxu0 %v1045_v18  ;;  %v104_v32 = vld [vmem:[#allocation6 + $0xb8] sm:$0xff]  ;;  %v989_v34 = vpack.c.bf16 %v86_v29, %v85_v28  ;;  %v1439_v36 = vld [vmem:[#allocation3] sm:$0xff]  ;;  %v303_v37 = vld [vmem:[#allocation8 + $0x20] sm:$0xff] }
  0x53   :  { %1048 = vmatprep.subr.bf16.mxu0 %v1047_v23  ;;  %v991_v35 = vpack.c.bf16 %v104_v32, %v103_v31  ;;  %v304_v38 = vld [vmem:[#allocation8 + $0x28] sm:$0xff]  ;;  %867 = vmatprep.mubr.f32.mxu1 %v1439_v36  ;;  %v321_v39 = vld [vmem:[#allocation8 + $0xb0] sm:$0xff]  ;;  %v322_v40 = vld [vmem:[#allocation8 + $0xb8] sm:$0xff] }
  0x54   :  { %939 = vmatprep.mubr.f32.mxu0 %v1439_v36  ;;  %v87_v41 = vld [vmem:[#allocation6 + $0x30] sm:$0xff]  ;;  %v88_v42 = vld [vmem:[#allocation6 + $0x38] sm:$0xff]  ;;  %v1053_v43 = vpack.c.bf16 %v304_v38, %v303_v37  ;;  %v105_v44 = vld [vmem:[#allocation6 + $0xc0] sm:$0xff]  ;;  %v1055_v46 = vpack.c.bf16 %v322_v40, %v321_v39 }
  0x55   :  { %v106_v45 = vld [vmem:[#allocation6 + $0xc8] sm:$0xff]  ;;  %v993_v47 = vpack.c.bf16 %v88_v42, %v87_v41  ;;  %v305_v49 = vld [vmem:[#allocation8 + $0x30] sm:$0xff]  ;;  %v306_v50 = vld [vmem:[#allocation8 + $0x38] sm:$0xff] }
  0x56   :  { %986 = vmatpush3.bf16.xpose.msra.mxu1 %v985_v19  ;;  %v995_v48 = vpack.c.bf16 %v106_v45, %v105_v44  ;;  %v323_v51 = vld [vmem:[#allocation8 + $0xc0] sm:$0xff]  ;;  %v324_v52 = vld [vmem:[#allocation8 + $0xc8] sm:$0xff]  ;;  %v1057_v55 = vpack.c.bf16 %v306_v50, %v305_v49  ;;  %v107_v56 = vld [vmem:[#allocation6 + $0xd0] sm:$0xff] }
  0x57   :  { %988 = vmatprep.subr.bf16.mxu1 %v987_v22  ;;  %v89_v53 = vld [vmem:[#allocation6 + $0x40] sm:$0xff]  ;;  %v90_v54 = vld [vmem:[#allocation6 + $0x48] sm:$0xff]  ;;  %v108_v57 = vld [vmem:[#allocation6 + $0xd8] sm:$0xff]  ;;  %v1059_v58 = vpack.c.bf16 %v324_v52, %v323_v51 }
  0x58   :  { %v997_v59 = vpack.c.bf16 %v90_v54, %v89_v53  ;;  %v999_v60 = vpack.c.bf16 %v108_v57, %v107_v56  ;;  %v307_v61 = vld [vmem:[#allocation8 + $0x40] sm:$0xff]  ;;  %v308_v62 = vld [vmem:[#allocation8 + $0x48] sm:$0xff]  ;;  %v325_v63 = vld [vmem:[#allocation8 + $0xd0] sm:$0xff] }
  0x59   :  { %v326_v0 = vld [vmem:[#allocation8 + $0xd8] sm:$0xff]  ;;  %v91_v1 = vld [vmem:[#allocation6 + $0x50] sm:$0xff]  ;;  %v1061_v3 = vpack.c.bf16 %v308_v62, %v307_v61  ;;  %v109_v4 = vld [vmem:[#allocation6 + $0xe0] sm:$0xff] }
  0x5a   :  { %1050 = vmatpush3.bf16.xpose.msra.mxu0 %v1049_v30  ;;  %v92_v2 = vld [vmem:[#allocation6 + $0x58] sm:$0xff]  ;;  %v110_v5 = vld [vmem:[#allocation6 + $0xe8] sm:$0xff]  ;;  %v1063_v6 = vpack.c.bf16 %v326_v0, %v325_v63  ;;  %v309_v9 = vld [vmem:[#allocation8 + $0x50] sm:$0xff] }
  0x5b   :  { %1052 = vmatprep.subr.bf16.mxu0 %v1051_v33  ;;  %v1001_v7 = vpack.c.bf16 %v92_v2, %v91_v1  ;;  %v1003_v8 = vpack.c.bf16 %v110_v5, %v109_v4  ;;  %v310_v10 = vld [vmem:[#allocation8 + $0x58] sm:$0xff]  ;;  %v327_v11 = vld [vmem:[#allocation8 + $0xe0] sm:$0xff]  ;;  %v328_v12 = vld [vmem:[#allocation8 + $0xe8] sm:$0xff] }
  0x5c   :  { %v93_v13 = vld [vmem:[#allocation6 + $0x60] sm:$0xff]  ;;  %v94_v14 = vld [vmem:[#allocation6 + $0x68] sm:$0xff]  ;;  %v1065_v15 = vpack.c.bf16 %v310_v10, %v309_v9  ;;  %v111_v16 = vld [vmem:[#allocation6 + $0xf0] sm:$0xff]  ;;  %v1067_v18 = vpack.c.bf16 %v328_v12, %v327_v11 }
  0x5d   :  { %v112_v17 = vld [vmem:[#allocation6 + $0xf8] sm:$0xff]  ;;  %v1005_v19 = vpack.c.bf16 %v94_v14, %v93_v13  ;;  %v311_v21 = vld [vmem:[#allocation8 + $0x60] sm:$0xff]  ;;  %v312_v22 = vld [vmem:[#allocation8 + $0x68] sm:$0xff] }
  0x5e   :  { %990 = vmatpush3.bf16.xpose.msra.mxu1 %v989_v34  ;;  %v1007_v20 = vpack.c.bf16 %v112_v17, %v111_v16  ;;  %v329_v23 = vld [vmem:[#allocation8 + $0xf0] sm:$0xff]  ;;  %v330_v24 = vld [vmem:[#allocation8 + $0xf8] sm:$0xff]  ;;  %v1069_v27 = vpack.c.bf16 %v312_v22, %v311_v21  ;;  %v129_v28 = vld [vmem:[#allocation6 + $0x180] sm:$0xff] }
  0x5f   :  { %992 = vmatprep.subr.bf16.mxu1 %v991_v35  ;;  %v95_v25 = vld [vmem:[#allocation6 + $0x70] sm:$0xff]  ;;  %v96_v26 = vld [vmem:[#allocation6 + $0x78] sm:$0xff]  ;;  %v130_v29 = vld [vmem:[#allocation6 + $0x188] sm:$0xff]  ;;  %v1071_v30 = vpack.c.bf16 %v330_v24, %v329_v23 }
  0x60   :  { %v1009_v31 = vpack.c.bf16 %v96_v26, %v95_v25  ;;  %v1011_v32 = vpack.c.bf16 %v130_v29, %v129_v28  ;;  %v313_v33 = vld [vmem:[#allocation8 + $0x70] sm:$0xff]  ;;  %v314_v34 = vld [vmem:[#allocation8 + $0x78] sm:$0xff]  ;;  %v113_v35 = vld [vmem:[#allocation6 + $0x100] sm:$0xff] }
  0x61   :  { %v114_v37 = vld [vmem:[#allocation6 + $0x108] sm:$0xff]  ;;  %v1073_v38 = vpack.c.bf16 %v314_v34, %v313_v33  ;;  %v131_v39 = vld [vmem:[#allocation6 + $0x190] sm:$0xff]  ;;  %v132_v40 = vld [vmem:[#allocation6 + $0x198] sm:$0xff] }
  0x62   :  { %1054 = vmatpush3.bf16.xpose.msra.mxu0 %v1053_v43  ;;  %v1013_v41 = vpack.c.bf16 %v114_v37, %v113_v35  ;;  %v1015_v42 = vpack.c.bf16 %v132_v40, %v131_v39  ;;  %v1443_v43 = vld [vmem:[#allocation3 + $0x8] sm:$0xff]  ;;  %v115_v44 = vld [vmem:[#allocation6 + $0x110] sm:$0xff]  ;;  %v588_v49 = vld [vmem:[#allocation9 + $0x28] sm:$0xff] }
  0x63   :  { %1056 = vmatprep.subr.bf16.mxu0 %v1055_v46  ;;  %v116_v45 = vld [vmem:[#allocation6 + $0x118] sm:$0xff]  ;;  %v133_v46 = vld [vmem:[#allocation6 + $0x1a0] sm:$0xff]  ;;  %v592_v54 = vld [vmem:[#allocation9 + $0x48] sm:$0xff] }
  0x64   :  { %v583_v50 = vld [vmem:[#allocation9] sm:$0xff]  ;;  %v1017_v51 = vpack.c.bf16 %v116_v45, %v115_v44  ;;  %v118_v62 = vld [vmem:[#allocation6 + $0x128] sm:$0xff]  ;;  %v135_v1 = vld [vmem:[#allocation6 + $0x1b0] sm:$0xff] }
  0x65   :  { %v587_v53 = vld [vmem:[#allocation9 + $0x20] sm:$0xff]  ;;  %v600_v63 = vld [vmem:[#allocation9 + $0x88] sm:$0xff]  ;;  %v136_v2 = vld [vmem:[#allocation6 + $0x1b8] sm:$0xff] }
  0x66   :  { %994 = vmatpush3.bf16.xpose.msra.mxu1 %v993_v47  ;;  %v134_v47 = vld [vmem:[#allocation6 + $0x1a8] sm:$0xff]  ;;  %v1109_v57 = vpack.c.bf16 %v587_v53, %v583_v50  ;;  %v595_v61 = vld [vmem:[#allocation9 + $0x60] sm:$0xff]  ;;  %v120_v10 = vld [vmem:[#allocation6 + $0x138] sm:$0xff] }
  0x67   :  { %996 = vmatprep.subr.bf16.mxu1 %v995_v48  ;;  %v584_v48 = vld [vmem:[#allocation9 + $0x8] sm:$0xff]  ;;  %v1019_v56 = vpack.c.bf16 %v134_v47, %v133_v46  ;;  %v603_v9 = vld [vmem:[#allocation9 + $0xa0] sm:$0xff]  ;;  %v139_v23 = vld [vmem:[#allocation6 + $0x1d0] sm:$0xff] }
  0x68   :  { %v1107_v52 = vpack.c.bf16 %v588_v49, %v584_v48  ;;  %v604_v0 = vld [vmem:[#allocation9 + $0xa8] sm:$0xff]  ;;  %v137_v13 = vld [vmem:[#allocation6 + $0x1c0] sm:$0xff]  ;;  %v140_v24 = vld [vmem:[#allocation6 + $0x1d8] sm:$0xff] }
  0x69   :  { %v1115_v5 = vpack.c.bf16 %v604_v0, %v600_v63  ;;  %v608_v11 = vld [vmem:[#allocation9 + $0xc8] sm:$0xff]  ;;  %v121_v21 = vld [vmem:[#allocation6 + $0x140] sm:$0xff]  ;;  %v123_v28 = vld [vmem:[#allocation6 + $0x150] sm:$0xff] }
  0x6a   :  { %1058 = vmatpush3.bf16.xpose.msra.mxu0 %v1057_v55  ;;  %v596_v55 = vld [vmem:[#allocation9 + $0x68] sm:$0xff]  ;;  %v124_v29 = vld [vmem:[#allocation6 + $0x158] sm:$0xff]  ;;  %v125_v34 = vld [vmem:[#allocation6 + $0x160] sm:$0xff] }
  0x6b   :  { %1060 = vmatprep.subr.bf16.mxu0 %v1059_v58  ;;  %v1111_v58 = vpack.c.bf16 %v596_v55, %v592_v54  ;;  %v612_v12 = vld [vmem:[#allocation9 + $0xe8] sm:$0xff]  ;;  %v143_v37 = vld [vmem:[#allocation6 + $0x1f0] sm:$0xff]  ;;  %v347_v44 = vld [vmem:[#allocation8 + $0x180] sm:$0xff] }
  0x6c   :  { %v138_v14 = vld [vmem:[#allocation6 + $0x1c8] sm:$0xff]  ;;  %v1119_v17 = vpack.c.bf16 %v612_v12, %v608_v11  ;;  %v331_v48 = vld [vmem:[#allocation8 + $0x100] sm:$0xff]  ;;  %v349_v50 = vld [vmem:[#allocation8 + $0x190] sm:$0xff] }
  0x6d   :  { %v122_v22 = vld [vmem:[#allocation6 + $0x148] sm:$0xff]  ;;  %v333_v54 = vld [vmem:[#allocation8 + $0x110] sm:$0xff]  ;;  %v334_v55 = vld [vmem:[#allocation8 + $0x118] sm:$0xff] }
  0x6e   :  { %998 = vmatpush3.bf16.xpose.msra.mxu1 %v997_v59  ;;  %v117_v59 = vld [vmem:[#allocation6 + $0x120] sm:$0xff]  ;;  %v1029_v26 = vpack.c.bf16 %v122_v22, %v121_v21  ;;  %v126_v35 = vld [vmem:[#allocation6 + $0x168] sm:$0xff]  ;;  %v354_v63 = vld [vmem:[#allocation8 + $0x1b8] sm:$0xff] }
  0x6f   :  { %1000 = vmatprep.subr.bf16.mxu1 %v999_v60  ;;  %v591_v60 = vld [vmem:[#allocation9 + $0x40] sm:$0xff]  ;;  %v1021_v4 = vpack.c.bf16 %v118_v62, %v117_v59  ;;  %v1037_v39 = vpack.c.bf16 %v126_v35, %v125_v34  ;;  %v348_v45 = vld [vmem:[#allocation8 + $0x188] sm:$0xff]  ;;  %v353_v62 = vld [vmem:[#allocation8 + $0x1b0] sm:$0xff] }
  0x70   :  { %v1075_v47 = vpack.c.bf16 %v348_v45, %v347_v44  ;;  %v332_v49 = vld [vmem:[#allocation8 + $0x108] sm:$0xff]  ;;  %v357_v21 = vld [vmem:[#allocation8 + $0x1d0] sm:$0xff]  ;;  %v358_v22 = vld [vmem:[#allocation8 + $0x1d8] sm:$0xff] }
  0x71   :  { %v360_v34 = vld [vmem:[#allocation8 + $0x1e8] sm:$0xff]  ;;  %v639_v45 = vld [vmem:[#allocation9 + $0x1c0] sm:$0xff] }
  0x72   :  { %1062 = vmatpush3.bf16.xpose.msra.mxu0 %v1061_v3  ;;  %v1113_v3 = vpack.c.bf16 %v595_v61, %v591_v60  ;;  %v335_v60 = vld [vmem:[#allocation8 + $0x120] sm:$0xff]  ;;  %v336_v61 = vld [vmem:[#allocation8 + $0x128] sm:$0xff] }
  0x73   :  { %1064 = vmatprep.subr.bf16.mxu0 %v1063_v6  ;;  %v1023_v6 = vpack.c.bf16 %v136_v2, %v135_v1  ;;  %v1085_v0 = vpack.c.bf16 %v336_v61, %v335_v60  ;;  %v1087_v1 = vpack.c.bf16 %v354_v63, %v353_v62  ;;  %v337_v2 = vld [vmem:[#allocation8 + $0x130] sm:$0xff] }
  0x76   :  { %1002 = vmatpush3.bf16.xpose.msra.mxu1 %v1001_v7  ;;  %v119_v7 = vld [vmem:[#allocation6 + $0x130] sm:$0xff] }
  0x77   :  { %1004 = vmatprep.subr.bf16.mxu1 %v1003_v8  ;;  %v599_v8 = vld [vmem:[#allocation9 + $0x80] sm:$0xff]  ;;  %v1025_v16 = vpack.c.bf16 %v120_v10, %v119_v7  ;;  %v356_v10 = vld [vmem:[#allocation8 + $0x1c8] sm:$0xff] }
  0x78   :  { %v615_v7 = vld [vmem:[#allocation9 + $0x100] sm:$0xff] }
  0x7a   :  { %1066 = vmatpush3.bf16.xpose.msra.mxu0 %v1065_v15  ;;  %v1117_v15 = vpack.c.bf16 %v603_v9, %v599_v8  ;;  %v619_v8 = vld [vmem:[#allocation9 + $0x120] sm:$0xff] }
  0x7b   :  { %1068 = vmatprep.subr.bf16.mxu0 %v1067_v18  ;;  %v1027_v18 = vpack.c.bf16 %v138_v14, %v137_v13  ;;  %v355_v9 = vld [vmem:[#allocation8 + $0x1c0] sm:$0xff]  ;;  %v1125_v11 = vpack.c.bf16 %v619_v8, %v615_v7 }
  0x7c   :  { %v1091_v13 = vpack.c.bf16 %v356_v10, %v355_v9  ;;  %v339_v14 = vld [vmem:[#allocation8 + $0x140] sm:$0xff] }
  0x7e   :  { %1006 = vmatpush3.bf16.xpose.msra.mxu1 %v1005_v19  ;;  %v607_v19 = vld [vmem:[#allocation9 + $0xc0] sm:$0xff] }
  0x7f   :  { %1008 = vmatprep.subr.bf16.mxu1 %v1007_v20  ;;  %v611_v20 = vld [vmem:[#allocation9 + $0xe0] sm:$0xff] }
  0x80   :  { %v1121_v25 = vpack.c.bf16 %v611_v20, %v607_v19  ;;  %v623_v19 = vld [vmem:[#allocation9 + $0x140] sm:$0xff] }
  0x81   :  { %v627_v20 = vld [vmem:[#allocation9 + $0x160] sm:$0xff] }
  0x82   :  { %1070 = vmatpush3.bf16.xpose.msra.mxu0 %v1069_v27  ;;  %v1031_v27 = vpack.c.bf16 %v140_v24, %v139_v23  ;;  %v1129_v23 = vpack.c.bf16 %v627_v20, %v623_v19  ;;  %v598_v19 = vld [vmem:[#allocation9 + $0x78] sm:$0xff] }
  0x83   :  { %1072 = vmatprep.subr.bf16.mxu0 %v1071_v30  ;;  %v141_v30 = vld [vmem:[#allocation6 + $0x1e0] sm:$0xff] }
  0x86   :  { %1010 = vmatpush3.bf16.xpose.msra.mxu1 %v1009_v31  ;;  %v142_v31 = vld [vmem:[#allocation6 + $0x1e8] sm:$0xff] }
  0x87   :  { %1012 = vmatprep.subr.bf16.mxu1 %v1011_v32  ;;  %v1033_v32 = vpack.c.bf16 %v124_v29, %v123_v28  ;;  %v1035_v33 = vpack.c.bf16 %v142_v31, %v141_v30  ;;  %v636_v28 = vld [vmem:[#allocation9 + $0x1a8] sm:$0xff]  ;;  %v342_v29 = vld [vmem:[#allocation8 + $0x158] sm:$0xff]  ;;  %v631_v31 = vld [vmem:[#allocation9 + $0x180] sm:$0xff] }
  0x8a   :  { %1074 = vmatpush3.bf16.xpose.msra.mxu0 %v1073_v38  ;;  %v144_v38 = vld [vmem:[#allocation6 + $0x1f8] sm:$0xff] }
  0x8b   :  { %1108 = vmatprep.subr.bf16.mxu0 %v1107_v52  ;;  %v1039_v40 = vpack.c.bf16 %v144_v38, %v143_v37  ;;  %v1077_v52 = vpack.c.bf16 %v332_v49, %v331_v48  ;;  %v362_v48 = vld [vmem:[#allocation8 + $0x1f8] sm:$0xff] }
  0x8d   :  { %868 = vmatmul.mubr.f32.vlgmr.msra.gmra.mrb[0].mxu1 %v1439_v36 }
  0x8e   :  { %1014 = vmatpush3.bf16.xpose.msra.mxu1 %v1013_v41  ;;  %869 = vmatprep.mubr.f32.mxu1 %v1443_v43  ;;  %v127_v41 = vld [vmem:[#allocation6 + $0x170] sm:$0xff] }
  0x8f   :  { %1016 = vmatprep.subr.bf16.mxu1 %v1015_v42  ;;  %v128_v42 = vld [vmem:[#allocation6 + $0x178] sm:$0xff] }
  0x90   :  { %v1041_v46 = vpack.c.bf16 %v128_v42, %v127_v41  ;;  %v644_v41 = vld [vmem:[#allocation9 + $0x1e8] sm:$0xff] }
  0x91   :  { %870 = vmatmul.mubr.f32.gmra.mrb[2].mxu1 %v1443_v43  ;;  %940 = vmatmul.mubr.f32.vlgmr.msra.gmra.mrb[0].mxu0 %v1439_v36  ;;  %v344_v42 = vld [vmem:[#allocation8 + $0x168] sm:$0xff] }
  0x92   :  { %903 = vmatprep.mubr.f32.mxu1 %v1439_v36  ;;  %941 = vmatprep.mubr.f32.mxu0 %v1443_v43 }
  0x93   :  { %1110 = vmatpush1.bf16.xpose.msra.mxu0 %v1109_v57  ;;  %v352_v57 = vld [vmem:[#allocation8 + $0x1a8] sm:$0xff] }
  0x94   :  { %1112 = vmatprep.subr.bf16.mxu0 %v1111_v58  ;;  %v1081_v58 = vpack.c.bf16 %v334_v55, %v333_v54  ;;  %v586_v55 = vld [vmem:[#allocation9 + $0x18] sm:$0xff] }
  0x95   :  { %942 = vmatmul.mubr.f32.gmra.mrb[2].mxu0 %v1443_v43 }
  0x96   :  { %1018 = vmatpush3.bf16.xpose.msra.mxu1 %v1017_v51  ;;  %v350_v51 = vld [vmem:[#allocation8 + $0x198] sm:$0xff] }
  0x97   :  { %1020 = vmatprep.subr.bf16.mxu1 %v1019_v56  ;;  %v1079_v53 = vpack.c.bf16 %v350_v51, %v349_v50  ;;  %v351_v56 = vld [vmem:[#allocation8 + $0x1a0] sm:$0xff] }
  0x98   :  { %v1083_v59 = vpack.c.bf16 %v352_v57, %v351_v56  ;;  %v590_v56 = vld [vmem:[#allocation9 + $0x38] sm:$0xff] }
  0x99   :  { %v1139_v57 = vpack.c.bf16 %v590_v56, %v586_v55 }
  0x9b   :  { %1114 = vmatpush1.bf16.xpose.msra.mxu0 %v1113_v3  ;;  %v616_v3 = vld [vmem:[#allocation9 + $0x108] sm:$0xff] }
  0x9c   :  { %1116 = vmatprep.subr.bf16.mxu0 %v1115_v5  ;;  %v338_v5 = vld [vmem:[#allocation8 + $0x138] sm:$0xff] }
  0x9d   :  { %v1089_v12 = vpack.c.bf16 %v338_v5, %v337_v2 }
  0x9e   :  { %1022 = vmatpush3.bf16.xpose.msra.mxu1 %v1021_v4  ;;  %v620_v4 = vld [vmem:[#allocation9 + $0x128] sm:$0xff] }
  0x9f   :  { %1024 = vmatprep.subr.bf16.mxu1 %v1023_v6  ;;  %v1123_v6 = vpack.c.bf16 %v620_v4, %v616_v3 }
  0xa3   :  { %1118 = vmatpush1.bf16.xpose.msra.mxu0 %v1117_v15  ;;  %v624_v15 = vld [vmem:[#allocation9 + $0x148] sm:$0xff] }
  0xa4   :  { %1120 = vmatprep.subr.bf16.mxu0 %v1119_v17  ;;  %v340_v17 = vld [vmem:[#allocation8 + $0x148] sm:$0xff] }
  0xa5   :  { %v1093_v24 = vpack.c.bf16 %v340_v17, %v339_v14 }
  0xa6   :  { %1026 = vmatpush3.bf16.xpose.msra.mxu1 %v1025_v16  ;;  %v628_v16 = vld [vmem:[#allocation9 + $0x168] sm:$0xff] }
  0xa7   :  { %1028 = vmatprep.subr.bf16.mxu1 %v1027_v18  ;;  %v1127_v18 = vpack.c.bf16 %v628_v16, %v624_v15  ;;  %v585_v15 = vld [vmem:[#allocation9 + $0x10] sm:$0xff] }
  0xa8   :  { %v589_v16 = vld [vmem:[#allocation9 + $0x30] sm:$0xff] }
  0xab   :  { %1122 = vmatpush1.bf16.xpose.msra.mxu0 %v1121_v25  ;;  %v1095_v25 = vpack.c.bf16 %v358_v22, %v357_v21 }
  0xac   :  { %1124 = vmatprep.subr.bf16.mxu0 %v1123_v6 }
  0xae   :  { %1030 = vmatpush3.bf16.xpose.msra.mxu1 %v1029_v26  ;;  %v341_v26 = vld [vmem:[#allocation8 + $0x150] sm:$0xff] }
  0xaf   :  { %1032 = vmatprep.subr.bf16.mxu1 %v1031_v27  ;;  %v632_v27 = vld [vmem:[#allocation9 + $0x188] sm:$0xff]  ;;  %v1097_v37 = vpack.c.bf16 %v342_v29, %v341_v26 }
  0xb0   :  { %v1131_v30 = vpack.c.bf16 %v636_v28, %v632_v27 }
  0xb3   :  { %1126 = vmatpush1.bf16.xpose.msra.mxu0 %v1125_v11 }
  0xb4   :  { %1128 = vmatprep.subr.bf16.mxu0 %v1127_v18  ;;  %v594_v18 = vld [vmem:[#allocation9 + $0x58] sm:$0xff] }
  0xb5   :  { %v1143_v26 = vpack.c.bf16 %v598_v19, %v594_v18 }
  0xb6   :  { %1034 = vmatpush3.bf16.xpose.msra.mxu1 %v1033_v32  ;;  %v635_v32 = vld [vmem:[#allocation9 + $0x1a0] sm:$0xff] }
  0xb7   :  { %1036 = vmatprep.subr.bf16.mxu1 %v1035_v33  ;;  %v359_v33 = vld [vmem:[#allocation8 + $0x1e0] sm:$0xff]  ;;  %v1133_v35 = vpack.c.bf16 %v635_v32, %v631_v31  ;;  %v597_v31 = vld [vmem:[#allocation9 + $0x70] sm:$0xff]  ;;  %v602_v32 = vld [vmem:[#allocation9 + $0x98] sm:$0xff] }
  0xb8   :  { %v1099_v38 = vpack.c.bf16 %v360_v34, %v359_v33  ;;  %v606_v33 = vld [vmem:[#allocation9 + $0xb8] sm:$0xff] }
  0xbb   :  { %1130 = vmatpush1.bf16.xpose.msra.mxu0 %v1129_v23  ;;  %v1141_v23 = vpack.c.bf16 %v589_v16, %v585_v15 }
  0xbc   :  { %1132 = vmatprep.subr.bf16.mxu0 %v1131_v30  ;;  %v593_v30 = vld [vmem:[#allocation9 + $0x50] sm:$0xff] }
  0xbd   :  { %v1145_v34 = vpack.c.bf16 %v597_v31, %v593_v30 }
  0xbe   :  { %1038 = vmatpush3.bf16.xpose.msra.mxu1 %v1037_v39  ;;  %v343_v39 = vld [vmem:[#allocation8 + $0x160] sm:$0xff] }
  0xbf   :  { %1040 = vmatprep.subr.bf16.mxu1 %v1039_v40  ;;  %v640_v40 = vld [vmem:[#allocation9 + $0x1c8] sm:$0xff]  ;;  %v1101_v50 = vpack.c.bf16 %v344_v42, %v343_v39  ;;  %v610_v39 = vld [vmem:[#allocation9 + $0xd8] sm:$0xff] }
  0xc0   :  { %v1135_v44 = vpack.c.bf16 %v644_v41, %v640_v40  ;;  %v614_v40 = vld [vmem:[#allocation9 + $0xf8] sm:$0xff] }
  0xc1   :  { %v1151_v42 = vpack.c.bf16 %v614_v40, %v610_v39 }
  0xc3   :  { %1134 = vmatpush1.bf16.xpose.msra.mxu0 %v1133_v35  ;;  %v1147_v35 = vpack.c.bf16 %v606_v33, %v602_v32 }
  0xc4   :  { %1136 = vmatprep.subr.bf16.mxu0 %v1135_v44  ;;  %v609_v44 = vld [vmem:[#allocation9 + $0xd0] sm:$0xff] }
  0xc6   :  { %1042 = vmatpush3.bf16.xpose.msra.mxu1 %v1041_v46  ;;  %v643_v46 = vld [vmem:[#allocation9 + $0x1e0] sm:$0xff] }
  0xc7   :  { %1076 = vmatprep.subr.bf16.mxu1 %v1075_v47  ;;  %v361_v47 = vld [vmem:[#allocation8 + $0x1f0] sm:$0xff]  ;;  %v1137_v49 = vpack.c.bf16 %v643_v46, %v639_v45  ;;  %v618_v46 = vld [vmem:[#allocation9 + $0x118] sm:$0xff] }
  0xc8   :  { %v1103_v51 = vpack.c.bf16 %v362_v48, %v361_v47  ;;  %v613_v45 = vld [vmem:[#allocation9 + $0xf0] sm:$0xff]  ;;  %v622_v47 = vld [vmem:[#allocation9 + $0x138] sm:$0xff] }
  0xc9   :  { %v1153_v48 = vpack.c.bf16 %v613_v45, %v609_v44 }
  0xcb   :  { %1138 = vmatpush1.bf16.xpose.msra.mxu0 %v1137_v49  ;;  %v1155_v49 = vpack.c.bf16 %v622_v47, %v618_v46 }
  0xcc   :  { %1140 = vmatprep.subr.bf16.mxu0 %v1139_v57 }
  0xcd   :  { %904 = vmatmul.mubr.f32.vlgmr.msra.gmra.mrb[4].mxu1 %v1439_v36 }
  0xce   :  { %1078 = vmatpush3.bf16.xpose.msra.mxu1 %v1077_v52  ;;  %905 = vmatprep.mubr.f32.mxu1 %v1443_v43  ;;  %v345_v52 = vld [vmem:[#allocation8 + $0x170] sm:$0xff] }
  0xcf   :  { %1080 = vmatprep.subr.bf16.mxu1 %v1079_v53  ;;  %v346_v53 = vld [vmem:[#allocation8 + $0x178] sm:$0xff] }
  0xd0   :  { %v1105_v54 = vpack.c.bf16 %v346_v53, %v345_v52  ;;  %v626_v52 = vld [vmem:[#allocation9 + $0x158] sm:$0xff] }
  0xd1   :  { %906 = vmatmul.mubr.f32.gmra.mrb[6].mxu1 %v1443_v43  ;;  %v630_v53 = vld [vmem:[#allocation9 + $0x178] sm:$0xff] }
  0xd2   :  { %975 = vmatprep.mubr.f32.mxu1 %v1439_v36  ;;  %v1159_v55 = vpack.c.bf16 %v630_v53, %v626_v52 }
  0xd6   :  { %1082 = vmatpush3.bf16.xpose.msra.mxu1 %v1081_v58 }
  0xd7   :  { %1084 = vmatprep.subr.bf16.mxu1 %v1083_v59 }
  0xde   :  { %1086 = vmatpush3.bf16.xpose.msra.mxu1 %v1085_v0 }
  0xdf   :  { %1088 = vmatprep.subr.bf16.mxu1 %v1087_v1 }
  0xe6   :  { %1090 = vmatpush3.bf16.xpose.msra.mxu1 %v1089_v12 }
  0xe7   :  { %1092 = vmatprep.subr.bf16.mxu1 %v1091_v13 }
  0xee   :  { %1094 = vmatpush3.bf16.xpose.msra.mxu1 %v1093_v24 }
  0xef   :  { %1096 = vmatprep.subr.bf16.mxu1 %v1095_v25 }
  0xf6   :  { %1098 = vmatpush3.bf16.xpose.msra.mxu1 %v1097_v37  ;;  %v601_v37 = vld [vmem:[#allocation9 + $0x90] sm:$0xff] }
  0xf7   :  { %1100 = vmatprep.subr.bf16.mxu1 %v1099_v38  ;;  %v605_v38 = vld [vmem:[#allocation9 + $0xb0] sm:$0xff] }
  0xf8   :  { %v1149_v41 = vpack.c.bf16 %v605_v38, %v601_v37 }
  0xfe   :  { %1102 = vmatpush3.bf16.xpose.msra.mxu1 %v1101_v50  ;;  %v617_v50 = vld [vmem:[#allocation9 + $0x110] sm:$0xff] }
  0xff   :  { %1104 = vmatprep.subr.bf16.mxu1 %v1103_v51  ;;  %v621_v51 = vld [vmem:[#allocation9 + $0x130] sm:$0xff] }
 0x106   :  { %1106 = vmatpush3.bf16.xpose.msra.mxu1 %v1105_v54  ;;  %v1157_v54 = vpack.c.bf16 %v621_v51, %v617_v50 }
 0x10d   :  { %976 = vmatmul.mubr.f32.vlgmr.msra.gmra.mrb[8].mxu1 %v1439_v36 }
 0x10e   :  { %977 = vmatprep.mubr.f32.mxu1 %v1443_v43 }
 0x111   :  { %978 = vmatmul.mubr.f32.gmra.mrb[10].mxu1 %v1443_v43 }
 0x160   :  { %v211_v58 = vpop.f32.mrb[0].mxu1 }
 0x161   :  { %v827_v59 = vmul.f32 -1.442695, %v211_v58  ;;  %v213_v60 = vpop.f32.mrb[1].mxu1 }
 0x162   :  { %v828_v61 = vmul.f32 -1.442695, %v213_v60 }
 0x163   :  { %1184 = vpow2.f32 %v827_v59  ;;  %v629_v59 = vld [vmem:[#allocation9 + $0x170] sm:$0xff] }
 0x164   :  { %1186 = vpow2.f32 %v828_v61  ;;  %v217_v62 = vpop.f32.mrb[2].mxu1  ;;  %v429_v63 = vpop.f32.mrb[0].mxu0  ;;  %v634_v61 = vld [vmem:[#allocation9 + $0x198] sm:$0xff] }
 0x165   :  { %v831_v0 = vmul.f32 -1.442695, %v217_v62  ;;  %v219_v1 = vpop.f32.mrb[3].mxu1  ;;  %v431_v2 = vpop.f32.mrb[1].mxu0 }
 0x166   :  { %v832_v36 = vmul.f32 -1.442695, %v219_v1 }
 0x167   :  { %1188 = vpow2.f32 %v831_v0 }
 0x168   :  { %1190 = vpow2.f32 %v832_v36  ;;  %v435_v3 = vpop.f32.mrb[2].mxu0  ;;  %v637_v36 = vld [vmem:[#allocation9 + $0x1b0] sm:$0xff] }
 0x169   :  { %v437_v43 = vpop.f32.mrb[3].mxu0 }
 0x16d   :  { %v1185_v4 = vpop.eup %1184 }
 0x16e   :  { %v1187_v5 = vpop.eup %1186  ;;  %v541_v6 = vadd.f32 1.0, %v1185_v4 }
 0x16f   :  { %v542_v7 = vadd.f32 1.0, %v1187_v5 }
 0x170   :  { %1192 = vrcp.f32 %v541_v6  ;;  %v641_v6 = vld [vmem:[#allocation9 + $0x1d0] sm:$0xff] }
 0x171   :  { %v1189_v8 = vpop.eup %1188  ;;  %1194 = vrcp.f32 %v542_v7  ;;  %v645_v7 = vld [vmem:[#allocation9 + $0x1f0] sm:$0xff] }
 0x172   :  { %v1191_v9 = vpop.eup %1190  ;;  %v545_v10 = vadd.f32 1.0, %v1189_v8  ;;  %v1169_v8 = vpack.c.bf16 %v645_v7, %v641_v6 }
 0x173   :  { %v546_v11 = vadd.f32 1.0, %v1191_v9 }
 0x174   :  { %1196 = vrcp.f32 %v545_v10 }
 0x175   :  { %1198 = vrcp.f32 %v546_v11 }
 0x17a   :  { %v1193_v12 = vpop.eup %1192 }
 0x17b   :  { %v1195_v13 = vpop.eup %1194  ;;  %v565_v14 = vmul.f32 %v1193_v12, %v211_v58  ;;  %v625_v58 = vld [vmem:[#allocation9 + $0x150] sm:$0xff] }
 0x17c   :  { %v566_v17 = vmul.f32 %v1195_v13, %v213_v60  ;;  %v1161_v0 = vpack.c.bf16 %v629_v59, %v625_v58 }
 0x17d   :  { %v573_v20 = vmul.f32 %v565_v14, %v429_v63 }
 0x17e   :  { %v1197_v21 = vpop.eup %1196  ;;  %v574_v22 = vmul.f32 %v566_v17, %v431_v2  ;;  %v633_v2 = vld [vmem:[#allocation9 + $0x190] sm:$0xff] }
 0x17f   :  { %v1199_v24 = vpop.eup %1198  ;;  %v569_v25 = vmul.f32 %v1197_v21, %v217_v62  ;;  %v638_v62 = vld [vmem:[#allocation9 + $0x1b8] sm:$0xff]  ;;  %v1165_v4 = vpack.c.bf16 %v637_v36, %v633_v2 }
 0x180   :  { %711 = vmatprep.mubr.f32.mxu0 %v574_v22  ;;  %v570_v27 = vmul.f32 %v1199_v24, %v219_v1  ;;  %v1163_v1 = vpack.c.bf16 %v638_v62, %v634_v61 }
 0x181   :  { %712 = vmatmul.mubr.f32.vlgmr.msra.gmra.mrb[4].mxu0 %v573_v20  ;;  %v577_v28 = vmul.f32 %v569_v25, %v435_v3  ;;  %v642_v3 = vld [vmem:[#allocation9 + $0x1d8] sm:$0xff] }
 0x182   :  { %v578_v29 = vmul.f32 %v570_v27, %v437_v43  ;;  %1142 = vmatpush1.bf16.xpose.msra.mxu0 %v1141_v23  ;;  %v646_v43 = vld [vmem:[#allocation9 + $0x1f8] sm:$0xff] }
 0x183   :  { %1144 = vmatprep.subr.bf16.mxu0 %v1143_v26  ;;  %v1167_v5 = vpack.c.bf16 %v646_v43, %v642_v3 }
 0x184   :  { %716 = vmatprep.mubr.f32.mxu0 %v578_v29 }
 0x185   :  { %717 = vmatmul.mubr.f32.gmra.mrb[6].mxu0 %v577_v28 }
 0x18a   :  { %1146 = vmatpush1.bf16.xpose.msra.mxu0 %v1145_v34 }
 0x18b   :  { %1148 = vmatprep.subr.bf16.mxu0 %v1147_v35 }
 0x192   :  { %1150 = vmatpush1.bf16.xpose.msra.mxu0 %v1149_v41 }
 0x193   :  { %1152 = vmatprep.subr.bf16.mxu0 %v1151_v42 }
 0x19a   :  { %1154 = vmatpush1.bf16.xpose.msra.mxu0 %v1153_v48 }
 0x19b   :  { %1156 = vmatprep.subr.bf16.mxu0 %v1155_v49 }
 0x1a0   :  { %v288_v56 = vpop.f32.mrb[4].mxu1 }
 0x1a1   :  { %v290_v57 = vpop.f32.mrb[5].mxu1  ;;  %v829_v9 = vmul.f32 -1.442695, %v288_v56 }
 0x1a2   :  { %1158 = vmatpush1.bf16.xpose.msra.mxu0 %v1157_v54  ;;  %v830_v10 = vmul.f32 -1.442695, %v290_v57 }
 0x1a3   :  { %1160 = vmatprep.subr.bf16.mxu0 %v1159_v55  ;;  %1200 = vpow2.f32 %v829_v9 }
 0x1a4   :  { %v294_v60 = vpop.f32.mrb[6].mxu1  ;;  %1202 = vpow2.f32 %v830_v10 }
 0x1a5   :  { %v296_v63 = vpop.f32.mrb[7].mxu1  ;;  %v833_v11 = vmul.f32 -1.442695, %v294_v60 }
 0x1a6   :  { %v834_v12 = vmul.f32 -1.442695, %v296_v63 }
 0x1a7   :  { %1204 = vpow2.f32 %v833_v11 }
 0x1a8   :  { %1206 = vpow2.f32 %v834_v12 }
 0x1aa   :  { %1162 = vmatpush1.bf16.xpose.msra.mxu0 %v1161_v0 }
 0x1ab   :  { %1164 = vmatprep.subr.bf16.mxu0 %v1163_v1 }
 0x1ad   :  { %v1201_v13 = vpop.eup %1200 }
 0x1ae   :  { %v1203_v14 = vpop.eup %1202  ;;  %v543_v15 = vadd.f32 1.0, %v1201_v13 }
 0x1af   :  { %v544_v17 = vadd.f32 1.0, %v1203_v14 }
 0x1b0   :  { %1208 = vrcp.f32 %v543_v15 }
 0x1b1   :  { %v1205_v16 = vpop.eup %1204  ;;  %1210 = vrcp.f32 %v544_v17 }
 0x1b2   :  { %1166 = vmatpush1.bf16.xpose.msra.mxu0 %v1165_v4  ;;  %v1207_v18 = vpop.eup %1206  ;;  %v547_v19 = vadd.f32 1.0, %v1205_v16 }
 0x1b3   :  { %1168 = vmatprep.subr.bf16.mxu0 %v1167_v5  ;;  %v548_v20 = vadd.f32 1.0, %v1207_v18 }
 0x1b4   :  { %1212 = vrcp.f32 %v547_v19 }
 0x1b5   :  { %1214 = vrcp.f32 %v548_v20 }
 0x1ba   :  { %1170 = vmatpush1.bf16.xpose.msra.mxu0 %v1169_v8  ;;  %v1209_v21 = vpop.eup %1208 }
 0x1bb   :  { %v1211_v22 = vpop.eup %1210  ;;  %v567_v23 = vmul.f32 %v1209_v21, %v288_v56 }
 0x1bc   :  { %v568_v25 = vmul.f32 %v1211_v22, %v290_v57 }
 0x1be   :  { %v1213_v24 = vpop.eup %1212 }
 0x1bf   :  { %v1215_v27 = vpop.eup %1214  ;;  %v571_v31 = vmul.f32 %v1213_v24, %v294_v60 }
 0x1c0   :  { %v572_v32 = vmul.f32 %v1215_v27, %v296_v63 }
 0x1e0   :  { %v506_v26 = vpop.f32.mrb[8].mxu1 }
 0x1e1   :  { %v575_v28 = vmul.f32 %v567_v23, %v506_v26  ;;  %v508_v29 = vpop.f32.mrb[9].mxu1 }
 0x1e2   :  { %v576_v30 = vmul.f32 %v568_v25, %v508_v29 }
 0x1e4   :  { %v512_v33 = vpop.f32.mrb[10].mxu1  ;;  %786 = vmatprep.mubr.f32.mxu0 %v576_v30 }
 0x1e5   :  { %v579_v34 = vmul.f32 %v571_v31, %v512_v33  ;;  %v514_v35 = vpop.f32.mrb[11].mxu1  ;;  %787 = vmatmul.mubr.f32.vlgmr.msra.gmra.mrb[4].mxu0 %v575_v28 }
 0x1e6   :  { %v580_v37 = vmul.f32 %v572_v32, %v514_v35 }
 0x1e8   :  { %791 = vmatprep.mubr.f32.mxu0 %v580_v37 }
 0x1e9   :  { %792 = vmatmul.mubr.f32.gmra.mrb[6].mxu0 %v579_v34 }
 0x2b8   :  { %v788_v38 = vpop.f32.mrb[4].mxu0 }
 0x2b9   :  { %806 = vst [vmem:[#allocation11] sm:$0xff] %v788_v38  ;;  %v790_v39 = vpop.f32.mrb[5].mxu0 }
 0x2bc   :  { %v793_v40 = vpop.f32.mrb[6].mxu0 }
 0x2bd   :  { %807 = vst [vmem:[#allocation11 + $0x8] sm:$0xff] %v793_v40  ;;  %v795_v41 = vpop.f32.mrb[7].mxu0 }
 0x2be   :  { %1315 = shalt.err (!%p1312_p8)
}
 0x2bf   :  { %s1316_s17 = scalar_lea.hbm %s1478_s4, 256 }
 0x2c0   :  { %p1317_p9 = scmp.ne.s32.totalorder %s1478_s4, %s1316_s17  ;;  %p1320_p10 = scmp.lt.u32.totalorder %s1316_s17, %s1478_s4 }
 0x2c2   :  { %p1322_p11 = pnand %p1320_p10, %p1317_p9 }
 0x2c4   :  { %1325 = shalt.err (!%p1322_p11)
}
 0x2c5   :  { %819 = dma.vmem_to_hbm [thread:$0]  %s814_s13, 256, %s1478_s4, [#allocation5], %s1336_s27, %s1336_s27, %s1337_s28  }
 0x2c6   :  { %1332 = dma.done.wait [#allocation5], 256  }
 0x2c7   :  { %1333 = vsyncadd [#allocation5], 4294967040 }
 0x2c8   :  { %823 = vsyncpa [#allocation4], 1 }
 0x2c9   :  { %824 = vsyncpa [#allocation7], 1 }
 0x2ca   :  { %825 = vsyncpa [#allocation10], 1 }
 0x2cb   :  { %826 = vsyncpa [#allocation5], 1 }

</bundles_post_ra>
